<compile_context>
chip_gen: v5e
topology: v5e:2x2
jax: 0.10.0
libtpu: 0.0.40
codegen_flags: <defaults>
</compile_context>

<pallas_src>
import jax
import jax.numpy as jnp
from jax import lax
from jax.experimental import pallas as pl
from jax.experimental.pallas import tpu as pltpu


def _gcn_kernel(a_ref, x_ref, w1_ref, b1_ref, w2_ref, b2_ref, o_ref):
    A = a_ref[...]                                            # (N, N) raw adjacency
    X = x_ref[...]                                            # (N, in_c)

    # --- GCN symmetric normalization without materializing A+I or A_hat ---
    #   deg  = rowsum(A) + 1            (self-loop folded in)
    #   dinv = deg^{-1/2}               (EUP rsqrt)
    deg = jnp.sum(A, axis=1, keepdims=True) + 1.0             # (N, 1)
    dinv = jnp.where(deg > 0.0, lax.rsqrt(deg), 0.0)          # (N, 1)

    def aggregate(Y):
        # A_hat @ Y == dinv * ( A @ (dinv*Y) + dinv*Y )
        Yd = dinv * Y
        return dinv * (jnp.dot(A, Yd, preferred_element_type=jnp.float32) + Yd)

    # F.dropout(p=0.5, training=False) is the identity at inference time.
    # TODO(synk): training-mode dropout (p=0.5) not implemented (inference path only).

    # Layer 1: aggregate first (in_c <= hid_c => fewer MXU FLOPs), then transform:
    #   relu(A_hat @ X @ W1 + b1)
    h = jnp.dot(aggregate(X), w1_ref[...], preferred_element_type=jnp.float32)
    h = jnp.maximum(h + b1_ref[...], 0.0)

    # Layer 2: transform first (out_c <= hid_c), then aggregate:
    #   A_hat @ (h @ W2) + b2
    z = jnp.dot(h, w2_ref[...], preferred_element_type=jnp.float32)
    o_ref[...] = aggregate(z) + b2_ref[...]


def gcn_forward(x, edge_index, w1, b1, w2, b2, edge_weight=None):
    x = x.astype(jnp.float32)
    N, in_c = x.shape
    hid_c = w1.shape[1]
    out_c = w2.shape[1]

    if edge_weight is None:
        edge_weight = jnp.ones((edge_index.shape[1],), jnp.float32)

    # Dense adjacency: A[target, source] += w  (aggregate source features into target).
    A = jnp.zeros((N, N), jnp.float32).at[edge_index[1], edge_index[0]].add(
        edge_weight.astype(jnp.float32)
    )

    # VMEM budget sized from the actual footprint (single N^2 adjacency buffer,
    # activations/intermediates, weights), with generous headroom; capped well
    # under physical VMEM.
    fp32 = 4
    footprint = fp32 * (
        N * N
        + N * (3 * in_c + 2 * hid_c + 3 * out_c + 2)
        + in_c * hid_c + hid_c * out_c + hid_c + out_c
    )
    vmem_limit = int(min(100 * 1024 * 1024, max(8 * 1024 * 1024, 8 * footprint)))

    return pl.pallas_call(
        _gcn_kernel,
        out_shape=jax.ShapeDtypeStruct((N, out_c), jnp.float32),
        # No grid: single full-array block per operand, no redundant pipelining.
        compiler_params=pltpu.CompilerParams(vmem_limit_bytes=vmem_limit),
    )(
        A,
        x,
        w1.astype(jnp.float32),
        b1.astype(jnp.float32).reshape(1, hid_c),
        w2.astype(jnp.float32),
        b2.astype(jnp.float32).reshape(1, out_c),
    )


def _reference(x, edge_index, w1, b1, w2, b2, edge_weight=None):
    # Pure-JAX mirror of the PyTorch GCN (eval-mode) forward for verification.
    N = x.shape[0]
    if edge_weight is None:
        edge_weight = jnp.ones((edge_index.shape[1],), jnp.float32)
    A = jnp.zeros((N, N), jnp.float32).at[edge_index[1], edge_index[0]].add(edge_weight)
    A = A + jnp.eye(N, dtype=jnp.float32)
    deg = A.sum(axis=1)
    dinv = jnp.where(deg > 0.0, 1.0 / jnp.sqrt(deg), 0.0)
    a_hat = dinv[:, None] * A * dinv[None, :]
    h = jnp.maximum(a_hat @ (x @ w1) + b1, 0.0)
    return a_hat @ (h @ w2) + b2


if __name__ == "__main__":
    key = jax.random.PRNGKey(0)
    kx, ks, kd, kw1, kb1, kw2, kb2 = jax.random.split(key, 7)

    # Small shapes consistent with the module: N nodes, small feature widths.
    N, E = 128, 256
    in_c, hid_c, out_c = 16, 32, 8

    x = jax.random.normal(kx, (N, in_c), dtype=jnp.float32)

    # Random undirected graph without self-loops (both directions present).
    src = jax.random.randint(ks, (E,), 0, N)
    dst = jax.random.randint(kd, (E,), 0, N)
    dst = jnp.where(dst == src, (dst + 1) % N, dst)
    edge_index = jnp.concatenate(
        [jnp.stack([src, dst]), jnp.stack([dst, src])], axis=1
    )  # (2, 2E)

    w1 = jax.random.normal(kw1, (in_c, hid_c), jnp.float32) * (2.0 / (in_c + hid_c)) ** 0.5
    b1 = jax.random.normal(kb1, (hid_c,), jnp.float32) * 0.1
    w2 = jax.random.normal(kw2, (hid_c, out_c), jnp.float32) * (2.0 / (hid_c + out_c)) ** 0.5
    b2 = jax.random.normal(kb2, (out_c,), jnp.float32) * 0.1

    out = gcn_forward(x, edge_index, w1, b1, w2, b2)
    out = jax.block_until_ready(out)

    ref = _reference(x, edge_index, w1, b1, w2, b2)
    if not jnp.allclose(out, ref, atol=1e-4, rtol=1e-4):
        raise AssertionError("Pallas GCN kernel output mismatch vs reference")

    print("KERNEL_OK")
</pallas_src>

<mosaic_0001>
module attributes {stable_mosaic.version = 11 : i64} {
  func.func @_gcn_kernel(%arg0: memref<128x128xf32, #tpu.memory_space<vmem>>, %arg1: memref<128x16xf32, #tpu.memory_space<vmem>>, %arg2: memref<16x32xf32, #tpu.memory_space<vmem>>, %arg3: memref<1x32xf32, #tpu.memory_space<vmem>>, %arg4: memref<32x8xf32, #tpu.memory_space<vmem>>, %arg5: memref<1x8xf32, #tpu.memory_space<vmem>>, %arg6: memref<128x8xf32, #tpu.memory_space<vmem>>) attributes {dimension_semantics = [], scalar_prefetch = 0 : i64, scratch_operands = 0 : i64, tpu.core_type = #tpu.core_type<tc>} {
    %c0 = arith.constant 0 : index
    %c0_0 = arith.constant 0 : index
    %0 = vector.load %arg0[%c0, %c0_0] : memref<128x128xf32, #tpu.memory_space<vmem>>, vector<128x128xf32>
    %c0_1 = arith.constant 0 : index
    %c0_2 = arith.constant 0 : index
    %1 = vector.load %arg1[%c0_1, %c0_2] : memref<128x16xf32, #tpu.memory_space<vmem>>, vector<128x16xf32>
    %cst = arith.constant dense<0.000000e+00> : vector<128xf32>
    %2 = vector.multi_reduction <add>, %0, %cst [1] : vector<128x128xf32> to vector<128xf32>
    %3 = vector.shape_cast %2 : vector<128xf32> to vector<128x1xf32>
    %cst_3 = arith.constant 1.000000e+00 : f32
    %4 = vector.broadcast %cst_3 : f32 to vector<128x1xf32>
    %5 = arith.addf %3, %4 : vector<128x1xf32>
    %cst_4 = arith.constant 0.000000e+00 : f32
    %6 = vector.broadcast %cst_4 : f32 to vector<128x1xf32>
    %7 = arith.cmpf ogt, %5, %6 : vector<128x1xf32>
    %8 = math.rsqrt %5 : vector<128x1xf32>
    %cst_5 = arith.constant 0.000000e+00 : f32
    %9 = vector.broadcast %cst_5 : f32 to vector<128x1xf32>
    %10 = arith.select %7, %8, %9 : vector<128x1xi1>, vector<128x1xf32>
    %11 = vector.broadcast %10 : vector<128x1xf32> to vector<128x16xf32>
    %12 = arith.mulf %11, %1 : vector<128x16xf32>
    %cst_6 = arith.constant dense<0.000000e+00> : vector<128x16xf32>
    %13 = tpu.matmul %0, %12, %cst_6 {dimension_numbers = #tpu.dot_dimension_numbers<[1], [0], [0], [1], [0, 0, 1, 1], [], []>} : vector<128x128xf32>, vector<128x16xf32>, vector<128x16xf32> -> vector<128x16xf32>
    %14 = arith.addf %13, %12 : vector<128x16xf32>
    %15 = vector.broadcast %10 : vector<128x1xf32> to vector<128x16xf32>
    %16 = arith.mulf %15, %14 : vector<128x16xf32>
    %c0_7 = arith.constant 0 : index
    %c0_8 = arith.constant 0 : index
    %17 = vector.load %arg2[%c0_7, %c0_8] : memref<16x32xf32, #tpu.memory_space<vmem>>, vector<16x32xf32>
    %cst_9 = arith.constant dense<0.000000e+00> : vector<128x32xf32>
    %18 = tpu.matmul %16, %17, %cst_9 {dimension_numbers = #tpu.dot_dimension_numbers<[1], [0], [0], [1], [0, 0, 1, 1], [], []>} : vector<128x16xf32>, vector<16x32xf32>, vector<128x32xf32> -> vector<128x32xf32>
    %c0_10 = arith.constant 0 : index
    %c0_11 = arith.constant 0 : index
    %19 = vector.load %arg3[%c0_10, %c0_11] : memref<1x32xf32, #tpu.memory_space<vmem>>, vector<1x32xf32>
    %20 = vector.broadcast %19 : vector<1x32xf32> to vector<128x32xf32>
    %21 = arith.addf %18, %20 : vector<128x32xf32>
    %cst_12 = arith.constant 0.000000e+00 : f32
    %22 = vector.broadcast %cst_12 : f32 to vector<128x32xf32>
    %23 = arith.maximumf %21, %22 : vector<128x32xf32>
    %c0_13 = arith.constant 0 : index
    %c0_14 = arith.constant 0 : index
    %24 = vector.load %arg4[%c0_13, %c0_14] : memref<32x8xf32, #tpu.memory_space<vmem>>, vector<32x8xf32>
    %cst_15 = arith.constant dense<0.000000e+00> : vector<128x8xf32>
    %25 = tpu.matmul %23, %24, %cst_15 {dimension_numbers = #tpu.dot_dimension_numbers<[1], [0], [0], [1], [0, 0, 1, 1], [], []>} : vector<128x32xf32>, vector<32x8xf32>, vector<128x8xf32> -> vector<128x8xf32>
    %26 = vector.broadcast %10 : vector<128x1xf32> to vector<128x8xf32>
    %27 = arith.mulf %26, %25 : vector<128x8xf32>
    %cst_16 = arith.constant dense<0.000000e+00> : vector<128x8xf32>
    %28 = tpu.matmul %0, %27, %cst_16 {dimension_numbers = #tpu.dot_dimension_numbers<[1], [0], [0], [1], [0, 0, 1, 1], [], []>} : vector<128x128xf32>, vector<128x8xf32>, vector<128x8xf32> -> vector<128x8xf32>
    %29 = arith.addf %28, %27 : vector<128x8xf32>
    %30 = vector.broadcast %10 : vector<128x1xf32> to vector<128x8xf32>
    %31 = arith.mulf %30, %29 : vector<128x8xf32>
    %c0_17 = arith.constant 0 : index
    %c0_18 = arith.constant 0 : index
    %32 = vector.load %arg5[%c0_17, %c0_18] : memref<1x8xf32, #tpu.memory_space<vmem>>, vector<1x8xf32>
    %33 = vector.broadcast %32 : vector<1x8xf32> to vector<128x8xf32>
    %34 = arith.addf %31, %33 : vector<128x8xf32>
    %c0_19 = arith.constant 0 : index
    %c0_20 = arith.constant 0 : index
    %35 = vector.load %arg6[%c0_19, %c0_20] : memref<128x8xf32, #tpu.memory_space<vmem>>, vector<128x8xf32>
    tpu.vector_store %arg6[%c0_19, %c0_20], %34 {strides = array<i32>} : memref<128x8xf32, #tpu.memory_space<vmem>>, vector<128x8xf32>,
    return
  }
}

</mosaic_0001>

<bundles_post_ra>
// kernel: tpu_custom_call.1
= control target key start
LH: loop header
LB: loop body
LE: loop exit
PB: predicated region body
PF: predicated region fallthrough
CT: control target
= control target key end

     0   :  { %s1719_s0 = inlined_call_operand.vmem [shape: f32[128,128], index: 0, kind: input, shape index: {}]   ;;  %s1720_s1 = inlined_call_operand.vmem [shape: f32[128,16], index: 1, kind: input, shape index: {}]   ;;  %s1721_s2 = inlined_call_operand.vmem [shape: f32[16,32], index: 2, kind: input, shape index: {}]   ;;  %s1722_s3 = inlined_call_operand.vmem [shape: f32[1,32], index: 3, kind: input, shape index: {}]   ;;  %s1723_s4 = inlined_call_operand.vmem [shape: f32[32,8], index: 4, kind: input, shape index: {}]   ;;  %s1724_s5 = inlined_call_operand.vmem [shape: f32[1,8], index: 5, kind: input, shape index: {}]   ;;  %s1725_s6 = inlined_call_operand.vmem [shape: f32[128,8], index: 6, kind: output, shape index: {}]  }
   0x1   :  { %v901_v0 = vld [vmem:[%s1719_s0 + $0x78] sm:$0xff]  ;;  %v906_v1 = vld [vmem:[%s1719_s0 + $0x68] sm:$0xff]  ;;  %v919_v3 = vld [vmem:[%s1719_s0 + $0x70] sm:$0xff] }
   0x2   :  { %v911_v2 = vld [vmem:[%s1719_s0 + $0x58] sm:$0xff]  ;;  %85 = vadd.xlane.f32.xlu0 %v901_v0  ;;  %81 = vadd.xlane.f32.xlu1 %v906_v1  ;;  %v924_v4 = vld [vmem:[%s1719_s0 + $0x60] sm:$0xff]  ;;  %v929_v5 = vld [vmem:[%s1719_s0 + $0x50] sm:$0xff] }
   0x3   :  { %77 = vadd.xlane.f32.xlu2 %v911_v2  ;;  %v937_v6 = vld [vmem:[%s1719_s0 + $0x48] sm:$0xff]  ;;  %v942_v7 = vld [vmem:[%s1719_s0 + $0x40] sm:$0xff]  ;;  %v947_v8 = vld [vmem:[%s1719_s0 + $0x38] sm:$0xff] }
   0x4   :  { %v955_v9 = vld [vmem:[%s1719_s0 + $0x30] sm:$0xff]  ;;  %v960_v10 = vld [vmem:[%s1719_s0 + $0x28] sm:$0xff]  ;;  %v965_v11 = vld [vmem:[%s1719_s0 + $0x20] sm:$0xff] }
   0x5   :  { %v973_v12 = vld [vmem:[%s1719_s0 + $0x18] sm:$0xff]  ;;  %v978_v13 = vld [vmem:[%s1719_s0 + $0x10] sm:$0xff]  ;;  %v983_v14 = vld [vmem:[%s1719_s0 + $0x8] sm:$0xff] }
   0x6   :  { %v991_v15 = vld [vmem:[%s1719_s0] sm:$0xff]  ;;  %v54_v56 = vld [vmem:[%s1720_s1 + $0x78] sm:$0xff] }
   0xa   :  { %83 = vadd.xlane.f32.xlu0 %v919_v3  ;;  %79 = vadd.xlane.f32.xlu1 %v924_v4 }
   0xb   :  { %75 = vadd.xlane.f32.xlu2 %v929_v5 }
  0x12   :  { %73 = vadd.xlane.f32.xlu0 %v937_v6  ;;  %71 = vadd.xlane.f32.xlu1 %v942_v7 }
  0x13   :  { %69 = vadd.xlane.f32.xlu2 %v947_v8 }
  0x1a   :  { %67 = vadd.xlane.f32.xlu0 %v955_v9  ;;  %65 = vadd.xlane.f32.xlu1 %v960_v10 }
  0x1b   :  { %63 = vadd.xlane.f32.xlu2 %v965_v11 }
  0x22   :  { %61 = vadd.xlane.f32.xlu0 %v973_v12  ;;  %59 = vadd.xlane.f32.xlu1 %v978_v13 }
  0x23   :  { %57 = vadd.xlane.f32.xlu2 %v983_v14 }
  0x2a   :  { %55 = vadd.xlane.f32.xlu0 %v991_v15 }
  0x75   :  { %v86_v16 = vpop.xlane.xlu0 %85  ;;  %v82_v17 = vpop.xlane.xlu1 %81 }
  0x76   :  { %v994_v18 = vadd.f32 1.0, %v86_v16  ;;  %v996_v19 = vadd.f32 1.0, %v82_v17  ;;  %v78_v20 = vpop.xlane.xlu2 %77 }
  0x77   :  { %v998_v21 = vadd.f32 1.0, %v78_v20 }
  0x78   :  { %818 = vrsqrt.f32 %v994_v18  ;;  %vm275_vm0 = vweird.f32 %v994_v18  ;;  %vm255_vm1 = vweird.f32 %v996_v19  ;;  %vm118_vm2 = vcmp.gt.f32.partialorder %v994_v18, 0.0 }
  0x79   :  { %820 = vrsqrt.f32 %v996_v19  ;;  %vm235_vm4 = vweird.f32 %v998_v21  ;;  %vm116_vm5 = vcmp.gt.f32.partialorder %v996_v19, 0.0 }
  0x7a   :  { %822 = vrsqrt.f32 %v998_v21 }
  0x7d   :  { %v84_v22 = vpop.xlane.xlu0 %83  ;;  %v80_v23 = vpop.xlane.xlu1 %79 }
  0x7e   :  { %v819_v24 = vpop.eup %818  ;;  %v1003_v25 = vadd.f32 1.0, %v84_v22  ;;  %v1005_v26 = vadd.f32 1.0, %v80_v23  ;;  %v76_v27 = vpop.xlane.xlu2 %75 }
  0x7f   :  { %v1007_v28 = vpop.eup %820  ;;  %v270_v29 = vmul.f32 %v819_v24, %v994_v18  ;;  %v1010_v30 = vadd.f32 1.0, %v76_v27  ;;  %vm276_vm3 = vweird.f32 %v819_v24 }
  0x80   :  { %v1012_v31 = vpop.eup %822  ;;  %v250_v32 = vmul.f32 %v1007_v28, %v996_v19  ;;  %824 = vrsqrt.f32 %v1003_v25  ;;  %vm265_vm6 = vweird.f32 %v1003_v25  ;;  %vm277_vm7 = vmor %vm275_vm0, %vm276_vm3  ;;  %vm256_vm8 = vweird.f32 %v1007_v28 }
  0x81   :  { %v271_v33 = vmul.f32 %v819_v24, %v270_v29  ;;  %v230_v34 = vmul.f32 %v1012_v31, %v998_v21  ;;  %826 = vrsqrt.f32 %v1005_v26  ;;  %vm245_vm9 = vweird.f32 %v1005_v26  ;;  %vm1073_vm12 = vmor %vm255_vm1, %vm256_vm8 }
  0x82   :  { %v251_v35 = vmul.f32 %v1007_v28, %v250_v32  ;;  %828 = vrsqrt.f32 %v1010_v30  ;;  %vm117_vm10 = vcmp.gt.f32.partialorder %v1003_v25, 0.0  ;;  %vm115_vm13 = vcmp.gt.f32.partialorder %v1005_v26, 0.0 }
  0x83   :  { %v272_v36 = vmul.f32 0.5, %v271_v33  ;;  %v231_v38 = vmul.f32 %v1012_v31, %v230_v34  ;;  %vm236_vm14 = vweird.f32 %v1012_v31  ;;  %vm225_vm15 = vweird.f32 %v1010_v30 }
  0x84   :  { %v252_v37 = vmul.f32 0.5, %v251_v35  ;;  %vm114_vm0 = vcmp.gt.f32.partialorder %v998_v21, 0.0  ;;  %vm1135_vm3 = vmor %vm235_vm4, %vm236_vm14 }
  0x85   :  { %v273_v39 = vsub.f32 1.5, %v272_v36  ;;  %v74_v40 = vpop.xlane.xlu0 %73  ;;  %v72_v41 = vpop.xlane.xlu1 %71  ;;  %v232_v52 = vmul.f32 0.5, %v231_v38 }
  0x86   :  { %v1025_v42 = vpop.eup %824  ;;  %v1027_v43 = vadd.f32 1.0, %v74_v40  ;;  %v1029_v44 = vadd.f32 1.0, %v72_v41  ;;  %v70_v45 = vpop.xlane.xlu2 %69  ;;  %v253_v47 = vsub.f32 1.5, %v252_v37 }
  0x87   :  { %v1032_v46 = vpop.eup %826  ;;  %v260_v48 = vmul.f32 %v1025_v42, %v1003_v25  ;;  %v1036_v49 = vadd.f32 1.0, %v70_v45  ;;  %v274_v50 = vmul.f32 %v819_v24, %v273_v39  ;;  %v233_v63 = vsub.f32 1.5, %v232_v52 }
  0x88   :  { %v1038_v51 = vpop.eup %828  ;;  %v240_v53 = vmul.f32 %v1032_v46, %v1005_v26  ;;  %830 = vrsqrt.f32 %v1027_v43  ;;  %v254_v62 = vmul.f32 %v1007_v28, %v253_v47  ;;  %vm266_vm11 = vweird.f32 %v1025_v42 }
  0x89   :  { %v261_v54 = vmul.f32 %v1025_v42, %v260_v48  ;;  %v220_v55 = vmul.f32 %v1038_v51, %v1010_v30  ;;  %832 = vrsqrt.f32 %v1029_v44  ;;  %v278_v58 = vsel %vm277_vm7, %v819_v24, %v274_v50  ;;  %v53_v48 = vld [vmem:[%s1720_s1 + $0x70] sm:$0xff] }
  0x8a   :  { %v241_v57 = vmul.f32 %v1032_v46, %v240_v53  ;;  %834 = vrsqrt.f32 %v1036_v49  ;;  %v1063_v61 = vsel %vm118_vm2, %v278_v58, 0.0  ;;  %v258_v34 = vsel %vm1073_vm12, %v1007_v28, %v254_v62  ;;  %vm267_vm2 = vmor %vm265_vm6, %vm266_vm11 }
  0x8b   :  { %v262_v59 = vmul.f32 0.5, %v261_v54  ;;  %v221_v60 = vmul.f32 %v1038_v51, %v220_v55  ;;  %v1067_v17 = vmul.f32 %v1063_v61, %v54_v56  ;;  %vm246_vm1 = vweird.f32 %v1032_v46  ;;  %v52_v55 = vld [vmem:[%s1720_s1 + $0x68] sm:$0xff] }
  0x8c   :  { %v242_v16 = vmul.f32 0.5, %v241_v57  ;;  %v234_v28 = vmul.f32 %v1012_v31, %v233_v63  ;;  %v1118_v50 = vsel %vm116_vm5, %v258_v34, 0.0  ;;  %vm113_vm5 = vcmp.gt.f32.partialorder %v1010_v30, 0.0  ;;  %vm247_vm7 = vmor %vm245_vm9, %vm246_vm1  ;;  %v48_v30 = vld [vmem:[%s1720_s1 + $0x48] sm:$0xff] }
  0x8d   :  { %v263_v20 = vsub.f32 1.5, %v262_v59  ;;  %v68_v22 = vpop.xlane.xlu0 %67  ;;  %v66_v23 = vpop.xlane.xlu1 %65  ;;  %v222_v27 = vmul.f32 0.5, %v221_v60  ;;  %311 = vmatpush.msra.mxu0 %v1067_v17  ;;  %vm215_vm6 = vweird.f32 %v1027_v43  ;;  %vm226_vm4 = vweird.f32 %v1038_v51 }
  0x8e   :  { %v1079_v24 = vpop.eup %830  ;;  %v1083_v29 = vadd.f32 1.0, %v68_v22  ;;  %v1085_v32 = vadd.f32 1.0, %v66_v23  ;;  %v64_v33 = vpop.xlane.xlu2 %63  ;;  %v243_v36 = vsub.f32 1.5, %v242_v16  ;;  %v238_v59 = vsel %vm1135_vm3, %v1012_v31, %v234_v28  ;;  %vm227_vm9 = vmor %vm225_vm15, %vm226_vm4 }
  0x8f   :  { %v1091_v35 = vpop.eup %832  ;;  %v210_v37 = vmul.f32 %v1079_v24, %v1027_v43  ;;  %v1095_v38 = vadd.f32 1.0, %v64_v33  ;;  %v264_v39 = vmul.f32 %v1025_v42, %v263_v20  ;;  %v223_v52 = vsub.f32 1.5, %v222_v27  ;;  %v51_v20 = vld [vmem:[%s1720_s1 + $0x60] sm:$0xff] }
  0x90   :  { %v1098_v40 = vpop.eup %834  ;;  %v200_v41 = vmul.f32 %v1091_v35, %v1029_v44  ;;  %836 = vrsqrt.f32 %v1083_v29  ;;  %v244_v19 = vmul.f32 %v1032_v46, %v243_v36  ;;  %v1153_v16 = vmul.f32 %v1118_v50, %v52_v55 }
  0x91   :  { %v211_v45 = vmul.f32 %v1079_v24, %v210_v37  ;;  %v190_v47 = vmul.f32 %v1098_v40, %v1036_v49  ;;  %838 = vrsqrt.f32 %v1085_v32  ;;  %v268_v54 = vsel %vm267_vm2, %v1025_v42, %v264_v39 }
  0x92   :  { %v201_v53 = vmul.f32 %v1091_v35, %v200_v41  ;;  %840 = vrsqrt.f32 %v1095_v38  ;;  %v1128_v57 = vsel %vm117_vm10, %v268_v54, 0.0  ;;  %v248_v22 = vsel %vm247_vm7, %v1032_v46, %v244_v19  ;;  %v50_v41 = vld [vmem:[%s1720_s1 + $0x58] sm:$0xff]  ;;  %v49_v54 = vld [vmem:[%s1720_s1 + $0x50] sm:$0xff] }
  0x93   :  { %v212_v56 = vmul.f32 0.5, %v211_v45  ;;  %v191_v42 = vmul.f32 %v1098_v40, %v190_v47  ;;  %v1143_v25 = vmul.f32 %v1128_v57, %v53_v48  ;;  %v1169_v33 = vsel %vm115_vm13, %v248_v22, 0.0 }
  0x94   :  { %v202_v60 = vmul.f32 0.5, %v201_v53  ;;  %v224_v34 = vmul.f32 %v1038_v51, %v223_v52  ;;  %vm205_vm8 = vweird.f32 %v1029_v44  ;;  %v1184_v26 = vsel %vm114_vm0, %v238_v59, 0.0 }
  0x95   :  { %v62_v62 = vpop.xlane.xlu0 %61  ;;  %v60_v63 = vpop.xlane.xlu1 %59  ;;  %312 = vmatpush.msra.mxu0 %v1143_v25  ;;  %v213_v46 = vsub.f32 1.5, %v212_v56  ;;  %v192_v45 = vmul.f32 0.5, %v191_v42  ;;  %v1193_v48 = vmul.f32 %v1169_v33, %v51_v20  ;;  %v1210_v56 = vmul.f32 %v1184_v26, %v50_v41 }
  0x96   :  { %v1160_v23 = vpop.eup %836  ;;  %v1163_v18 = vadd.f32 1.0, %v62_v62  ;;  %v1165_v31 = vadd.f32 1.0, %v60_v63  ;;  %v58_v27 = vpop.xlane.xlu2 %57  ;;  %v203_v52 = vsub.f32 1.5, %v202_v60  ;;  %v228_v19 = vsel %vm227_vm9, %v1038_v51, %v224_v34 }
  0x97   :  { %v1172_v36 = vpop.eup %838  ;;  %v180_v37 = vmul.f32 %v1160_v23, %v1083_v29  ;;  %v1177_v39 = vadd.f32 1.0, %v58_v27  ;;  %313 = vmatpush.msra.mxu0 %v1153_v16  ;;  %vm195_vm10 = vweird.f32 %v1036_v49  ;;  %v1217_v59 = vsel %vm113_vm5, %v228_v19, 0.0 }
  0x98   :  { %v1186_v28 = vpop.eup %840  ;;  %v170_v47 = vmul.f32 %v1172_v36, %v1085_v32  ;;  %842 = vrsqrt.f32 %v1163_v18  ;;  %vm185_vm11 = vweird.f32 %v1083_v29  ;;  %v1222_v62 = vmul.f32 %v1217_v59, %v49_v54 }
  0x99   :  { %v181_v53 = vmul.f32 %v1160_v23, %v180_v37  ;;  %v160_v21 = vmul.f32 %v1186_v28, %v1095_v38  ;;  %844 = vrsqrt.f32 %v1165_v31  ;;  %314 = vmatpush.msra.mxu0 %v1193_v48  ;;  %v214_v63 = vmul.f32 %v1079_v24, %v213_v46 }
  0x9a   :  { %v171_v55 = vmul.f32 %v1172_v36, %v170_v47  ;;  %846 = vrsqrt.f32 %v1177_v39  ;;  %vm216_vm12 = vweird.f32 %v1079_v24  ;;  %v193_v51 = vsub.f32 1.5, %v192_v45 }
  0x9b   :  { %v182_v58 = vmul.f32 0.5, %v181_v53  ;;  %v161_v42 = vmul.f32 %v1186_v28, %v160_v21  ;;  %315 = vmatpush.msra.mxu0 %v1210_v56  ;;  %vm112_vm13 = vcmp.gt.f32.partialorder %v1027_v43, 0.0  ;;  %vm217_vm14 = vmor %vm215_vm6, %vm216_vm12  ;;  %v204_v27 = vmul.f32 %v1091_v35, %v203_v52 }
  0x9c   :  { %v172_v60 = vmul.f32 0.5, %v171_v55  ;;  %vm175_vm15 = vweird.f32 %v1085_v32  ;;  %vm165_vm0 = vweird.f32 %v1095_v38  ;;  %v218_v41 = vsel %vm217_vm14, %v1079_v24, %v214_v63  ;;  %v47_v55 = vld [vmem:[%s1720_s1 + $0x40] sm:$0xff] }
  0x9d   :  { %v1226_v20 = vmul.f32 0.5, %v161_v42  ;;  %v56_v22 = vpop.xlane.xlu0 %55  ;;  %v183_v46 = vsub.f32 1.5, %v182_v58  ;;  %316 = vmatpush.msra.mxu0 %v1222_v62  ;;  %vm206_vm1 = vweird.f32 %v1091_v35  ;;  %v1248_v52 = vsel %vm112_vm13, %v218_v41, 0.0 }
  0x9e   :  { %v1235_v34 = vpop.eup %842  ;;  %v1240_v37 = vadd.f32 1.0, %v56_v22  ;;  %v173_v43 = vsub.f32 1.5, %v172_v60  ;;  %vm111_vm2 = vcmp.gt.f32.partialorder %v1029_v44, 0.0  ;;  %v1258_v24 = vmul.f32 %v1248_v52, %v48_v30  ;;  %vm207_vm3 = vmor %vm205_vm8, %vm206_vm1 }
  0x9f   :  { %v1244_v45 = vpop.eup %844  ;;  %v150_v47 = vmul.f32 %v1235_v34, %v1163_v18  ;;  %v163_v21 = vsub.f32 1.5, %v1226_v20  ;;  %v208_v42 = vsel %vm207_vm3, %v1091_v35, %v204_v27  ;;  %v194_v60 = vmul.f32 %v1098_v40, %v193_v51  ;;  %v46_v51 = vld [vmem:[%s1720_s1 + $0x38] sm:$0xff] }
  0xa0   :  { %v1251_v53 = vpop.eup %846  ;;  %v140_v54 = vmul.f32 %v1244_v45, %v1165_v31  ;;  %848 = vrsqrt.f32 %v1240_v37  ;;  %vm155_vm5 = vweird.f32 %v1163_v18  ;;  %317 = vmatpush.msra.mxu0 %v1258_v24  ;;  %v1273_v20 = vsel %vm111_vm2, %v208_v42, 0.0 }
  0xa1   :  { %v151_v19 = vmul.f32 %v1235_v34, %v150_v47  ;;  %v130_v58 = vmul.f32 %v1251_v53, %v1177_v39  ;;  %vm110_vm6 = vcmp.gt.f32.partialorder %v1036_v49, 0.0  ;;  %vm196_vm7 = vweird.f32 %v1098_v40 }
  0xa2   :  { %v141_v63 = vmul.f32 %v1244_v45, %v140_v54  ;;  %vm145_vm4 = vweird.f32 %v1165_v31  ;;  %vm135_vm8 = vweird.f32 %v1177_v39  ;;  %v1281_v35 = vmul.f32 %v1273_v20, %v47_v55  ;;  %vm197_vm9 = vmor %vm195_vm10, %vm196_vm7 }
  0xa3   :  { %v152_v44 = vmul.f32 0.5, %v151_v19  ;;  %v131_v22 = vmul.f32 %v1251_v53, %v130_v58  ;;  %v184_v30 = vmul.f32 %v1160_v23, %v183_v46  ;;  %v198_v41 = vsel %vm197_vm9, %v1098_v40, %v194_v60  ;;  %v45_v19 = vld [vmem:[%s1720_s1 + $0x30] sm:$0xff] }
  0xa4   :  { %v142_v27 = vmul.f32 0.5, %v141_v63  ;;  %vm109_vm12 = vcmp.gt.f32.partialorder %v1083_v29, 0.0  ;;  %vm186_vm13 = vweird.f32 %v1160_v23  ;;  %318 = vmatpush.msra.mxu0 %v1281_v35  ;;  %v1295_v55 = vsel %vm110_vm6, %v198_v41, 0.0 }
  0xa5   :  { %v153_v47 = vsub.f32 1.5, %v152_v44  ;;  %v132_v54 = vmul.f32 0.5, %v131_v22  ;;  %vm187_vm10 = vmor %vm185_vm11, %vm186_vm13  ;;  %v174_v40 = vmul.f32 %v1172_v36, %v173_v43  ;;  %v1306_v58 = vmul.f32 %v1295_v55, %v46_v51  ;;  %v44_v43 = vld [vmem:[%s1720_s1 + $0x28] sm:$0xff] }
  0xa6   :  { %v1303_v46 = vpop.eup %848  ;;  %v188_v42 = vsel %vm187_vm10, %v1160_v23, %v184_v30  ;;  %vm108_vm14 = vcmp.gt.f32.partialorder %v1085_v32, 0.0  ;;  %vm176_vm1 = vweird.f32 %v1172_v36  ;;  %v143_v49 = vsub.f32 1.5, %v142_v27  ;;  %v43_v32 = vld [vmem:[%s1720_s1 + $0x20] sm:$0xff] }
  0xa7   :  { %v133_v60 = vsub.f32 1.5, %v132_v54  ;;  %v120_v63 = vmul.f32 %v1303_v46, %v1240_v37  ;;  %v1315_v44 = vsel %vm109_vm12, %v188_v42, 0.0  ;;  %vm177_vm11 = vmor %vm175_vm15, %vm176_vm1  ;;  %319 = vmatpush.msra.mxu0 %v1306_v58  ;;  %v164_v51 = vmul.f32 %v1186_v28, %v163_v21 }
  0xa8   :  { %v1324_v23 = vmul.f32 %v1315_v44, %v45_v19  ;;  %v178_v22 = vsel %vm177_vm11, %v1172_v36, %v174_v40  ;;  %vm166_vm2 = vweird.f32 %v1186_v28  ;;  %vm107_vm15 = vcmp.gt.f32.partialorder %v1095_v38, 0.0  ;;  %v42_v38 = vld [vmem:[%s1720_s1 + $0x18] sm:$0xff] }
  0xa9   :  { %v121_v29 = vmul.f32 %v1303_v46, %v120_v63  ;;  %v1330_v30 = vsel %vm108_vm14, %v178_v22, 0.0  ;;  %vm167_vm3 = vmor %vm165_vm0, %vm166_vm2  ;;  %v154_v27 = vmul.f32 %v1235_v34, %v153_v47  ;;  %vm106_vm6 = vcmp.gt.f32.partialorder %v1163_v18, 0.0 }
  0xaa   :  { %320 = vmatpush.msra.mxu0 %v1324_v23  ;;  %v1341_v36 = vmul.f32 %v1330_v30, %v44_v43  ;;  %v168_v21 = vsel %vm167_vm3, %v1186_v28, %v164_v51  ;;  %vm156_vm7 = vweird.f32 %v1235_v34  ;;  %v144_v47 = vmul.f32 %v1244_v45, %v143_v49  ;;  %v41_v49 = vld [vmem:[%s1720_s1 + $0x10] sm:$0xff] }
  0xab   :  { %v122_v41 = vmul.f32 0.5, %v121_v29  ;;  %v1346_v54 = vsel %vm107_vm15, %v168_v21, 0.0  ;;  %vm157_vm0 = vmor %vm155_vm5, %vm156_vm7  ;;  %vm146_vm9 = vweird.f32 %v1244_v45  ;;  %vm105_vm12 = vcmp.gt.f32.partialorder %v1165_v31, 0.0  ;;  %v40_v31 = vld [vmem:[%s1720_s1 + $0x8] sm:$0xff]  ;;  %v39_v29 = vld [vmem:[%s1720_s1] sm:$0xff] }
  0xac   :  { %321 = vmatpush.msra.mxu0 %v1341_v36  ;;  %v1357_v28 = vmul.f32 %v1346_v54, %v43_v32  ;;  %v158_v19 = vsel %vm157_vm0, %v1235_v34, %v154_v27  ;;  %vm147_vm13 = vmor %vm145_vm4, %vm146_vm9  ;;  %v134_v40 = vmul.f32 %v1251_v53, %v133_v60  ;;  %vm136_vm5 = vweird.f32 %v1251_v53 }
  0xad   :  { %v123_v18 = vsub.f32 1.5, %v122_v41  ;;  %v1364_v42 = vsel %vm106_vm6, %v158_v19, 0.0  ;;  %v148_v63 = vsel %vm147_vm13, %v1244_v45, %v144_v47  ;;  %vm137_vm4 = vmor %vm135_vm8, %vm136_vm5  ;;  %vm126_vm10 = vweird.f32 %v1303_v46 }
  0xae   :  { %322 = vmatpush.msra.mxu0 %v1357_v28  ;;  %v298_v34 = vmul.f32 %v1364_v42, %v42_v38  ;;  %v1373_v43 = vsel %vm105_vm12, %v148_v63, 0.0  ;;  %vm125_vm14 = vweird.f32 %v1240_v37  ;;  %vm104_vm1 = vcmp.gt.f32.partialorder %v1177_v39, 0.0 }
  0xaf   :  { %v138_v45 = vsel %vm137_vm4, %v1251_v53, %v134_v40  ;;  %v124_v60 = vmul.f32 %v1303_v46, %v123_v18  ;;  %v297_v22 = vmul.f32 %v1373_v43, %v41_v49  ;;  %vm127_vm8 = vmor %vm125_vm14, %vm126_vm10  ;;  %vm103_vm11 = vcmp.gt.f32.partialorder %v1240_v37, 0.0 }
  0xb0   :  { %323 = vmatpush.msra.mxu0 %v298_v34  ;;  %v1386_v51 = vsel %vm104_vm1, %v138_v45, 0.0  ;;  %vm398_vm2 = vcmask 130048   ;;  %vm532_vm15 = vcmask 261120   ;;  %vm763_vm3 = vcmask 64512  }
  0xb1   :  { %v128_v32 = vsel %vm127_vm8, %v1303_v46, %v124_v60  ;;  %v296_v39 = vmul.f32 %v1386_v51, %v40_v31 }
  0xb2   :  { %324 = vmatpush.msra.mxu0 %v297_v22  ;;  %v1394_v53 = vsel %vm103_vm11, %v128_v32, 0.0 }
  0xb3   :  { %v295_v27 = vmul.f32 %v1394_v53, %v39_v29 }
  0xb4   :  { %325 = vmatpush.msra.mxu0 %v296_v39 }
  0xb6   :  { %326 = vmatpush.msra.mxu0 %v295_v27 }
  0xb7   :  { %327 = vmatmul.f32.vlgmr.msra.gmra.mxu0 %v991_v15 }
  0xbf   :  { %330 = vmatmul.f32.gmra.mxu0 %v983_v14 }
  0xc7   :  { %333 = vmatmul.f32.gmra.mxu0 %v978_v13 }
  0xcf   :  { %336 = vmatmul.f32.gmra.mxu0 %v973_v12 }
  0xd7   :  { %339 = vmatmul.f32.gmra.mxu0 %v965_v11  ;;  %v393_v11 = vld [vmem:[%s1721_s2 + $0x8] sm:$0xff] }
  0xd8   :  { %461 = vmatpush.msra.mxu1 %v393_v11 }
  0xdf   :  { %342 = vmatmul.f32.gmra.mxu0 %v960_v10 }
  0xe7   :  { %345 = vmatmul.f32.gmra.mxu0 %v955_v9  ;;  %v392_v9 = vld [vmem:[%s1721_s2] sm:$0xff] }
  0xe8   :  { %462 = vmatpush.msra.mxu1 %v392_v9 }
  0xef   :  { %348 = vmatmul.f32.gmra.mxu0 %v947_v8 }
  0xf7   :  { %351 = vmatmul.f32.gmra.mxu0 %v942_v7 }
  0xff   :  { %354 = vmatmul.f32.gmra.mxu0 %v937_v6 }
 0x107   :  { %357 = vmatmul.f32.gmra.mxu0 %v929_v5 }
 0x10f   :  { %360 = vmatmul.f32.gmra.mxu0 %v911_v2 }
 0x117   :  { %363 = vmatmul.f32.gmra.mxu0 %v924_v4 }
 0x11f   :  { %366 = vmatmul.f32.gmra.mxu0 %v906_v1 }
 0x127   :  { %369 = vmatmul.f32.gmra.mxu0 %v919_v3 }
 0x12f   :  { %372 = vmatmul.f32.gmra.mxu0 %v901_v0 }
 0x134   :  { %v328_v5 = vpop.f32.mrf.mxu0 }
 0x135   :  { %v329_v2 = vadd.f32 %v328_v5, %v295_v27  ;;  %v529_v5 = vld [vmem:[%s1723_s4 + $0x8] sm:$0xff] }
 0x137   :  { %v376_v4 = vmul.f32 %v329_v2, %v1394_v53  ;;  %v528_v2 = vld [vmem:[%s1723_s4] sm:$0xff] }
 0x139   :  { %784 = vmatmul.msk.f32.vlgmr.msra.gmra.mxu1 %vm398_vm2, %v376_v4 }
 0x13c   :  { %v331_v6 = vpop.f32.mrf.mxu0 }
 0x13d   :  { %v332_v7 = vadd.f32 %v331_v6, %v296_v39 }
 0x13f   :  { %v377_v8 = vmul.f32 %v332_v7, %v1386_v51 }
 0x141   :  { %785 = vmatmul.msk.f32.gmra.mxu1 %vm398_vm2, %v377_v8 }
 0x144   :  { %v334_v10 = vpop.f32.mrf.mxu0 }
 0x145   :  { %v335_v12 = vadd.f32 %v334_v10, %v297_v22 }
 0x147   :  { %v378_v1 = vmul.f32 %v335_v12, %v1373_v43 }
 0x149   :  { %786 = vmatmul.msk.f32.gmra.mxu1 %vm398_vm2, %v378_v1 }
 0x14c   :  { %v337_v0 = vpop.f32.mrf.mxu0 }
 0x14d   :  { %v338_v3 = vadd.f32 %v337_v0, %v298_v34 }
 0x14f   :  { %v379_v37 = vmul.f32 %v338_v3, %v1364_v42 }
 0x151   :  { %787 = vmatmul.msk.f32.gmra.mxu1 %vm398_vm2, %v379_v37 }
 0x154   :  { %v340_v46 = vpop.f32.mrf.mxu0 }
 0x155   :  { %v341_v21 = vadd.f32 %v340_v46, %v1357_v28 }
 0x157   :  { %v380_v41 = vmul.f32 %v341_v21, %v1346_v54 }
 0x159   :  { %788 = vmatmul.msk.f32.gmra.mxu1 %vm398_vm2, %v380_v41 }
 0x15c   :  { %v343_v38 = vpop.f32.mrf.mxu0 }
 0x15d   :  { %v344_v47 = vadd.f32 %v343_v38, %v1341_v36 }
 0x15f   :  { %v381_v19 = vmul.f32 %v344_v47, %v1330_v30 }
 0x161   :  { %789 = vmatmul.msk.f32.gmra.mxu1 %vm398_vm2, %v381_v19 }
 0x164   :  { %v346_v40 = vpop.f32.mrf.mxu0 }
 0x165   :  { %v347_v18 = vadd.f32 %v346_v40, %v1324_v23 }
 0x167   :  { %v382_v49 = vmul.f32 %v347_v18, %v1315_v44 }
 0x169   :  { %790 = vmatmul.msk.f32.gmra.mxu1 %vm398_vm2, %v382_v49 }
 0x16c   :  { %v349_v63 = vpop.f32.mrf.mxu0 }
 0x16d   :  { %v350_v28 = vadd.f32 %v349_v63, %v1306_v58 }
 0x16f   :  { %v383_v34 = vmul.f32 %v350_v28, %v1295_v55 }
 0x171   :  { %791 = vmatmul.msk.f32.gmra.mxu1 %vm398_vm2, %v383_v34 }
 0x174   :  { %v352_v31 = vpop.f32.mrf.mxu0 }
 0x175   :  { %v353_v36 = vadd.f32 %v352_v31, %v1281_v35 }
 0x177   :  { %v384_v45 = vmul.f32 %v353_v36, %v1273_v20 }
 0x179   :  { %792 = vmatmul.msk.f32.gmra.mxu1 %vm398_vm2, %v384_v45 }
 0x17c   :  { %v355_v60 = vpop.f32.mrf.mxu0 }
 0x17d   :  { %v356_v23 = vadd.f32 %v355_v60, %v1258_v24  ;;  %v531_v24 = vld [vmem:[%s1723_s4 + $0x18] sm:$0xff] }
 0x17e   :  { %593 = vmatpush.msra.mxu2 %v531_v24 }
 0x17f   :  { %v385_v22 = vmul.f32 %v356_v23, %v1248_v52 }
 0x181   :  { %793 = vmatmul.msk.f32.gmra.mxu1 %vm398_vm2, %v385_v22 }
 0x184   :  { %v358_v29 = vpop.f32.mrf.mxu0 }
 0x185   :  { %v359_v58 = vadd.f32 %v358_v29, %v1222_v62 }
 0x187   :  { %v386_v32 = vmul.f32 %v359_v58, %v1217_v59 }
 0x189   :  { %794 = vmatmul.msk.f32.gmra.mxu1 %vm398_vm2, %v386_v32 }
 0x18c   :  { %v361_v39 = vpop.f32.mrf.mxu0 }
 0x18d   :  { %v362_v35 = vadd.f32 %v361_v39, %v1210_v56  ;;  %v530_v56 = vld [vmem:[%s1723_s4 + $0x10] sm:$0xff] }
 0x18e   :  { %594 = vmatpush.msra.mxu2 %v530_v56 }
 0x18f   :  { %v387_v27 = vmul.f32 %v362_v35, %v1184_v26 }
 0x190   :  { %595 = vmatpush.msra.mxu2 %v529_v5 }
 0x191   :  { %795 = vmatmul.msk.f32.gmra.mxu1 %vm398_vm2, %v387_v27 }
 0x192   :  { %596 = vmatpush.msra.mxu2 %v528_v2 }
 0x194   :  { %v364_v11 = vpop.f32.mrf.mxu0 }
 0x195   :  { %v365_v9 = vadd.f32 %v364_v11, %v1193_v48 }
 0x197   :  { %v388_v62 = vmul.f32 %v365_v9, %v1169_v33 }
 0x199   :  { %796 = vmatmul.msk.f32.gmra.mxu1 %vm398_vm2, %v388_v62 }
 0x19c   :  { %v367_v4 = vpop.f32.mrf.mxu0 }
 0x19d   :  { %v368_v48 = vadd.f32 %v367_v4, %v1153_v16  ;;  %v1478_v16 = vld [vmem:[%s1722_s3] ss:$0 sm:$0xff] }
 0x19f   :  { %v389_v6 = vmul.f32 %v368_v48, %v1118_v50 }
 0x1a1   :  { %797 = vmatmul.msk.f32.gmra.mxu1 %vm398_vm2, %v389_v6 }
 0x1a4   :  { %v370_v7 = vpop.f32.mrf.mxu0 }
 0x1a5   :  { %v371_v8 = vadd.f32 %v370_v7, %v1143_v25 }
 0x1a7   :  { %v390_v10 = vmul.f32 %v371_v8, %v1128_v57 }
 0x1a9   :  { %798 = vmatmul.msk.f32.gmra.mxu1 %vm398_vm2, %v390_v10 }
 0x1ac   :  { %v373_v12 = vpop.f32.mrf.mxu0 }
 0x1ad   :  { %v374_v1 = vadd.f32 %v373_v12, %v1067_v17 }
 0x1af   :  { %v391_v0 = vmul.f32 %v374_v1, %v1063_v61 }
 0x1b1   :  { %799 = vmatmul.msk.f32.gmra.mxu1 %vm398_vm2, %v391_v0 }
 0x1b6   :  { %v464_v3 = vpop.f32.mrf.mxu1 }
 0x1b7   :  { %v465_v37 = vadd.f32 %v1478_v16, %v464_v3 }
 0x1b9   :  { %v512_v25 = vmax.f32 %v465_v37, 0.0 }
 0x1bb   :  { %800 = vmatmul.msk.f32.vlgmr.msra.gmra.mxu2 %vm532_vm15, %v512_v25 }
 0x1be   :  { %v467_v46 = vpop.f32.mrf.mxu1 }
 0x1bf   :  { %v468_v21 = vadd.f32 %v1478_v16, %v467_v46 }
 0x1c1   :  { %v513_v17 = vmax.f32 %v468_v21, 0.0 }
 0x1c3   :  { %801 = vmatmul.msk.f32.gmra.mxu2 %vm532_vm15, %v513_v17 }
 0x1c6   :  { %v470_v41 = vpop.f32.mrf.mxu1 }
 0x1c7   :  { %v471_v38 = vadd.f32 %v1478_v16, %v470_v41 }
 0x1c9   :  { %v514_v47 = vmax.f32 %v471_v38, 0.0 }
 0x1cb   :  { %802 = vmatmul.msk.f32.gmra.mxu2 %vm532_vm15, %v514_v47 }
 0x1ce   :  { %v473_v19 = vpop.f32.mrf.mxu1 }
 0x1cf   :  { %v474_v40 = vadd.f32 %v1478_v16, %v473_v19 }
 0x1d1   :  { %v515_v18 = vmax.f32 %v474_v40, 0.0 }
 0x1d3   :  { %803 = vmatmul.msk.f32.gmra.mxu2 %vm532_vm15, %v515_v18 }
 0x1d6   :  { %v476_v49 = vpop.f32.mrf.mxu1 }
 0x1d7   :  { %v477_v63 = vadd.f32 %v1478_v16, %v476_v49 }
 0x1d9   :  { %v516_v28 = vmax.f32 %v477_v63, 0.0 }
 0x1db   :  { %804 = vmatmul.msk.f32.gmra.mxu2 %vm532_vm15, %v516_v28 }
 0x1de   :  { %v479_v34 = vpop.f32.mrf.mxu1 }
 0x1df   :  { %v480_v31 = vadd.f32 %v1478_v16, %v479_v34 }
 0x1e1   :  { %v517_v36 = vmax.f32 %v480_v31, 0.0 }
 0x1e3   :  { %805 = vmatmul.msk.f32.gmra.mxu2 %vm532_vm15, %v517_v36 }
 0x1e6   :  { %v482_v45 = vpop.f32.mrf.mxu1 }
 0x1e7   :  { %v483_v60 = vadd.f32 %v1478_v16, %v482_v45 }
 0x1e9   :  { %v518_v23 = vmax.f32 %v483_v60, 0.0 }
 0x1eb   :  { %806 = vmatmul.msk.f32.gmra.mxu2 %vm532_vm15, %v518_v23 }
 0x1ee   :  { %v485_v22 = vpop.f32.mrf.mxu1 }
 0x1ef   :  { %v486_v29 = vadd.f32 %v1478_v16, %v485_v22 }
 0x1f1   :  { %v519_v58 = vmax.f32 %v486_v29, 0.0 }
 0x1f3   :  { %807 = vmatmul.msk.f32.gmra.mxu2 %vm532_vm15, %v519_v58 }
 0x1f6   :  { %v488_v32 = vpop.f32.mrf.mxu1 }
 0x1f7   :  { %v489_v39 = vadd.f32 %v1478_v16, %v488_v32 }
 0x1f9   :  { %v520_v35 = vmax.f32 %v489_v39, 0.0 }
 0x1fb   :  { %808 = vmatmul.msk.f32.gmra.mxu2 %vm532_vm15, %v520_v35 }
 0x1fe   :  { %v491_v27 = vpop.f32.mrf.mxu1 }
 0x1ff   :  { %v492_v24 = vadd.f32 %v1478_v16, %v491_v27 }
 0x201   :  { %v521_v11 = vmax.f32 %v492_v24, 0.0 }
 0x203   :  { %809 = vmatmul.msk.f32.gmra.mxu2 %vm532_vm15, %v521_v11 }
 0x206   :  { %v494_v9 = vpop.f32.mrf.mxu1 }
 0x207   :  { %v495_v62 = vadd.f32 %v1478_v16, %v494_v9 }
 0x209   :  { %v522_v56 = vmax.f32 %v495_v62, 0.0 }
 0x20b   :  { %810 = vmatmul.msk.f32.gmra.mxu2 %vm532_vm15, %v522_v56 }
 0x20e   :  { %v497_v5 = vpop.f32.mrf.mxu1 }
 0x20f   :  { %v498_v2 = vadd.f32 %v1478_v16, %v497_v5 }
 0x211   :  { %v523_v4 = vmax.f32 %v498_v2, 0.0 }
 0x213   :  { %811 = vmatmul.msk.f32.gmra.mxu2 %vm532_vm15, %v523_v4  ;;  %v850_v4 = vld [vmem:[%s1719_s0 + $0x18] sm:$0xff] }
 0x216   :  { %v500_v48 = vpop.f32.mrf.mxu1 }
 0x217   :  { %v501_v6 = vadd.f32 %v1478_v16, %v500_v48  ;;  %v851_v48 = vld [vmem:[%s1719_s0 + $0x20] sm:$0xff] }
 0x219   :  { %v524_v7 = vmax.f32 %v501_v6, 0.0  ;;  %v852_v6 = vld [vmem:[%s1719_s0 + $0x28] sm:$0xff] }
 0x21b   :  { %812 = vmatmul.msk.f32.gmra.mxu2 %vm532_vm15, %v524_v7  ;;  %v856_v7 = vld [vmem:[%s1719_s0 + $0x48] sm:$0xff] }
 0x21e   :  { %v503_v8 = vpop.f32.mrf.mxu1 }
 0x21f   :  { %v504_v10 = vadd.f32 %v1478_v16, %v503_v8  ;;  %v857_v8 = vld [vmem:[%s1719_s0 + $0x50] sm:$0xff] }
 0x221   :  { %v525_v12 = vmax.f32 %v504_v10, 0.0  ;;  %v858_v10 = vld [vmem:[%s1719_s0 + $0x58] sm:$0xff] }
 0x223   :  { %813 = vmatmul.msk.f32.gmra.mxu2 %vm532_vm15, %v525_v12  ;;  %v859_v12 = vld [vmem:[%s1719_s0 + $0x60] sm:$0xff] }
 0x226   :  { %v506_v1 = vpop.f32.mrf.mxu1 }
 0x227   :  { %v507_v0 = vadd.f32 %v1478_v16, %v506_v1  ;;  %v860_v1 = vld [vmem:[%s1719_s0 + $0x68] sm:$0xff] }
 0x229   :  { %v526_v3 = vmax.f32 %v507_v0, 0.0  ;;  %v861_v0 = vld [vmem:[%s1719_s0 + $0x70] sm:$0xff] }
 0x22b   :  { %814 = vmatmul.msk.f32.gmra.mxu2 %vm532_vm15, %v526_v3  ;;  %v862_v3 = vld [vmem:[%s1719_s0 + $0x78] sm:$0xff] }
 0x22e   :  { %v509_v37 = vpop.f32.mrf.mxu1 }
 0x22f   :  { %v510_v25 = vadd.f32 %v1478_v16, %v509_v37 }
 0x231   :  { %v527_v46 = vmax.f32 %v510_v25, 0.0 }
 0x233   :  { %815 = vmatmul.msk.f32.gmra.mxu2 %vm532_vm15, %v527_v46  ;;  %v1609_v46 = vld [vmem:[%s1724_s5] ss:$0 sm:$0xff] }
 0x23e   :  { %v598_v21 = vpop.f32.mrf.mxu2 }
 0x23f   :  { %v646_v2 = vmul.f32 %v598_v21, %v1394_v53 }
 0x246   :  { %v601_v17 = vpop.f32.mrf.mxu2 }
 0x247   :  { %v647_v5 = vmul.f32 %v601_v17, %v1386_v51 }
 0x24e   :  { %v604_v41 = vpop.f32.mrf.mxu2 }
 0x24f   :  { %v648_v56 = vmul.f32 %v604_v41, %v1373_v43 }
 0x256   :  { %v607_v38 = vpop.f32.mrf.mxu2 }
 0x257   :  { %v649_v62 = vmul.f32 %v607_v38, %v1364_v42 }
 0x25e   :  { %v610_v47 = vpop.f32.mrf.mxu2 }
 0x25f   :  { %v1556_v9 = vmul.f32 %v610_v47, %v1346_v54 }
 0x266   :  { %v613_v19 = vpop.f32.mrf.mxu2 }
 0x267   :  { %v1552_v11 = vmul.f32 %v613_v19, %v1330_v30 }
 0x26e   :  { %v616_v40 = vpop.f32.mrf.mxu2 }
 0x26f   :  { %v1548_v24 = vmul.f32 %v616_v40, %v1315_v44 }
 0x276   :  { %v619_v18 = vpop.f32.mrf.mxu2 }
 0x277   :  { %v1544_v27 = vmul.f32 %v619_v18, %v1295_v55 }
 0x27e   :  { %v622_v49 = vpop.f32.mrf.mxu2 }
 0x27f   :  { %v1540_v35 = vmul.f32 %v622_v49, %v1273_v20 }
 0x286   :  { %v625_v63 = vpop.f32.mrf.mxu2 }
 0x287   :  { %v1536_v39 = vmul.f32 %v625_v63, %v1248_v52 }
 0x28e   :  { %v628_v28 = vpop.f32.mrf.mxu2 }
 0x28f   :  { %v1532_v32 = vmul.f32 %v628_v28, %v1217_v59 }
 0x296   :  { %v631_v34 = vpop.f32.mrf.mxu2 }
 0x297   :  { %v1528_v58 = vmul.f32 %v631_v34, %v1184_v26 }
 0x29e   :  { %v634_v31 = vpop.f32.mrf.mxu2 }
 0x29f   :  { %v1524_v29 = vmul.f32 %v634_v31, %v1169_v33 }
 0x2a6   :  { %v637_v36 = vpop.f32.mrf.mxu2 }
 0x2a7   :  { %v1520_v22 = vmul.f32 %v637_v36, %v1118_v50 }
 0x2ae   :  { %v640_v45 = vpop.f32.mrf.mxu2 }
 0x2af   :  { %v1516_v23 = vmul.f32 %v640_v45, %v1128_v57 }
 0x2b6   :  { %v643_v60 = vpop.f32.mrf.mxu2 }
 0x2b7   :  { %v1513_v16 = vmul.f32 %v643_v60, %v1063_v61 }
 0x2b9   :  { %662 = vmatpush.msra.mxu3 %v1513_v16 }
 0x2bb   :  { %663 = vmatpush.msra.mxu3 %v1516_v23 }
 0x2bd   :  { %664 = vmatpush.msra.mxu3 %v1520_v22 }
 0x2bf   :  { %665 = vmatpush.msra.mxu3 %v1524_v29 }
 0x2c1   :  { %666 = vmatpush.msra.mxu3 %v1528_v58 }
 0x2c3   :  { %667 = vmatpush.msra.mxu3 %v1532_v32 }
 0x2c5   :  { %668 = vmatpush.msra.mxu3 %v1536_v39 }
 0x2c7   :  { %669 = vmatpush.msra.mxu3 %v1540_v35 }
 0x2c9   :  { %670 = vmatpush.msra.mxu3 %v1544_v27 }
 0x2cb   :  { %671 = vmatpush.msra.mxu3 %v1548_v24 }
 0x2cd   :  { %672 = vmatpush.msra.mxu3 %v1552_v11 }
 0x2cf   :  { %673 = vmatpush.msra.mxu3 %v1556_v9 }
 0x2d1   :  { %674 = vmatpush.msra.mxu3 %v649_v62 }
 0x2d3   :  { %675 = vmatpush.msra.mxu3 %v648_v56 }
 0x2d5   :  { %676 = vmatpush.msra.mxu3 %v647_v5 }
 0x2d7   :  { %677 = vmatpush.msra.mxu3 %v646_v2 }
 0x2d8   :  { %678 = vmatmul.f32.vlgmr.msra.gmra.mxu3 %v991_v15  ;;  %v855_v15 = vld [vmem:[%s1719_s0 + $0x40] sm:$0xff] }
 0x2e0   :  { %681 = vmatmul.f32.gmra.mxu3 %v983_v14  ;;  %v853_v14 = vld [vmem:[%s1719_s0 + $0x30] sm:$0xff] }
 0x2e8   :  { %684 = vmatmul.f32.gmra.mxu3 %v978_v13  ;;  %v854_v13 = vld [vmem:[%s1719_s0 + $0x38] sm:$0xff] }
 0x2f0   :  { %687 = vmatmul.f32.gmra.mxu3 %v850_v4 }
 0x2f8   :  { %690 = vmatmul.f32.gmra.mxu3 %v851_v48 }
 0x300   :  { %693 = vmatmul.f32.gmra.mxu3 %v852_v6 }
 0x308   :  { %696 = vmatmul.f32.gmra.mxu3 %v853_v14 }
 0x310   :  { %699 = vmatmul.f32.gmra.mxu3 %v854_v13 }
 0x318   :  { %702 = vmatmul.f32.gmra.mxu3 %v855_v15 }
 0x320   :  { %705 = vmatmul.f32.gmra.mxu3 %v856_v7 }
 0x328   :  { %708 = vmatmul.f32.gmra.mxu3 %v857_v8 }
 0x330   :  { %711 = vmatmul.f32.gmra.mxu3 %v858_v10 }
 0x338   :  { %714 = vmatmul.f32.gmra.mxu3 %v859_v12 }
 0x340   :  { %717 = vmatmul.f32.gmra.mxu3 %v860_v1 }
 0x348   :  { %720 = vmatmul.f32.gmra.mxu3 %v861_v0 }
 0x350   :  { %723 = vmatmul.f32.gmra.mxu3 %v862_v3 }
 0x35b   :  { %v679_v37 = vpop.f32.mrf.mxu3 }
 0x35c   :  { %v680_v25 = vadd.f32 %v679_v37, %v646_v2 }
 0x35e   :  { %v727_v21 = vmul.f32 %v680_v25, %v1394_v53 }
 0x360   :  { %v747_v17 = vadd.f32 %v1609_v46, %v727_v21 }
 0x362   :  { %764 = vst.msk [vmem:[%s1725_s6] sm:$0xff] %vm763_vm3, %v747_v17 }
 0x363   :  { %v682_v41 = vpop.f32.mrf.mxu3 }
 0x364   :  { %v683_v38 = vadd.f32 %v682_v41, %v647_v5 }
 0x366   :  { %v728_v47 = vmul.f32 %v683_v38, %v1386_v51 }
 0x368   :  { %v748_v19 = vadd.f32 %v1609_v46, %v728_v47 }
 0x36a   :  { %765 = vst.msk [vmem:[%s1725_s6 + $0x8] sm:$0xff] %vm763_vm3, %v748_v19 }
 0x36b   :  { %v685_v53 = vpop.f32.mrf.mxu3 }
 0x36c   :  { %v686_v40 = vadd.f32 %v685_v53, %v648_v56 }
 0x36e   :  { %v729_v18 = vmul.f32 %v686_v40, %v1373_v43 }
 0x370   :  { %v749_v49 = vadd.f32 %v1609_v46, %v729_v18 }
 0x372   :  { %766 = vst.msk [vmem:[%s1725_s6 + $0x10] sm:$0xff] %vm763_vm3, %v749_v49 }
 0x373   :  { %v688_v63 = vpop.f32.mrf.mxu3 }
 0x374   :  { %v689_v51 = vadd.f32 %v688_v63, %v649_v62 }
 0x376   :  { %v730_v28 = vmul.f32 %v689_v51, %v1364_v42 }
 0x378   :  { %v750_v34 = vadd.f32 %v1609_v46, %v730_v28 }
 0x37a   :  { %767 = vst.msk [vmem:[%s1725_s6 + $0x18] sm:$0xff] %vm763_vm3, %v750_v34 }
 0x37b   :  { %v691_v31 = vpop.f32.mrf.mxu3 }
 0x37c   :  { %v692_v43 = vadd.f32 %v691_v31, %v1556_v9 }
 0x37e   :  { %v731_v36 = vmul.f32 %v692_v43, %v1346_v54 }
 0x380   :  { %v751_v45 = vadd.f32 %v1609_v46, %v731_v36 }
 0x382   :  { %768 = vst.msk [vmem:[%s1725_s6 + $0x20] sm:$0xff] %vm763_vm3, %v751_v45 }
 0x383   :  { %v694_v42 = vpop.f32.mrf.mxu3 }
 0x384   :  { %v695_v60 = vadd.f32 %v694_v42, %v1552_v11 }
 0x386   :  { %v732_v62 = vmul.f32 %v695_v60, %v1330_v30 }
 0x388   :  { %v752_v56 = vadd.f32 %v1609_v46, %v732_v62 }
 0x38a   :  { %769 = vst.msk [vmem:[%s1725_s6 + $0x28] sm:$0xff] %vm763_vm3, %v752_v56 }
 0x38b   :  { %v697_v54 = vpop.f32.mrf.mxu3 }
 0x38c   :  { %v698_v9 = vadd.f32 %v697_v54, %v1548_v24 }
 0x38e   :  { %v733_v5 = vmul.f32 %v698_v9, %v1315_v44 }
 0x390   :  { %v753_v2 = vadd.f32 %v1609_v46, %v733_v5 }
 0x392   :  { %770 = vst.msk [vmem:[%s1725_s6 + $0x30] sm:$0xff] %vm763_vm3, %v753_v2 }
 0x393   :  { %v700_v30 = vpop.f32.mrf.mxu3 }
 0x394   :  { %v701_v11 = vadd.f32 %v700_v30, %v1544_v27 }
 0x396   :  { %v734_v4 = vmul.f32 %v701_v11, %v1295_v55 }
 0x398   :  { %v754_v48 = vadd.f32 %v1609_v46, %v734_v4 }
 0x39a   :  { %771 = vst.msk [vmem:[%s1725_s6 + $0x38] sm:$0xff] %vm763_vm3, %v754_v48 }
 0x39b   :  { %v703_v44 = vpop.f32.mrf.mxu3 }
 0x39c   :  { %v704_v24 = vadd.f32 %v703_v44, %v1540_v35 }
 0x39e   :  { %v735_v6 = vmul.f32 %v704_v24, %v1273_v20 }
 0x3a0   :  { %v755_v14 = vadd.f32 %v1609_v46, %v735_v6 }
 0x3a2   :  { %772 = vst.msk [vmem:[%s1725_s6 + $0x40] sm:$0xff] %vm763_vm3, %v755_v14 }
 0x3a3   :  { %v706_v55 = vpop.f32.mrf.mxu3 }
 0x3a4   :  { %v707_v27 = vadd.f32 %v706_v55, %v1536_v39 }
 0x3a6   :  { %v736_v13 = vmul.f32 %v707_v27, %v1248_v52 }
 0x3a8   :  { %v756_v15 = vadd.f32 %v1609_v46, %v736_v13 }
 0x3aa   :  { %773 = vst.msk [vmem:[%s1725_s6 + $0x48] sm:$0xff] %vm763_vm3, %v756_v15 }
 0x3ab   :  { %v709_v20 = vpop.f32.mrf.mxu3 }
 0x3ac   :  { %v710_v35 = vadd.f32 %v709_v20, %v1532_v32 }
 0x3ae   :  { %v737_v7 = vmul.f32 %v710_v35, %v1217_v59 }
 0x3b0   :  { %v757_v8 = vadd.f32 %v1609_v46, %v737_v7 }
 0x3b2   :  { %774 = vst.msk [vmem:[%s1725_s6 + $0x50] sm:$0xff] %vm763_vm3, %v757_v8 }
 0x3b3   :  { %v712_v52 = vpop.f32.mrf.mxu3 }
 0x3b4   :  { %v713_v39 = vadd.f32 %v712_v52, %v1528_v58 }
 0x3b6   :  { %v738_v10 = vmul.f32 %v713_v39, %v1184_v26 }
 0x3b8   :  { %v758_v12 = vadd.f32 %v1609_v46, %v738_v10 }
 0x3ba   :  { %775 = vst.msk [vmem:[%s1725_s6 + $0x58] sm:$0xff] %vm763_vm3, %v758_v12 }
 0x3bb   :  { %v715_v59 = vpop.f32.mrf.mxu3 }
 0x3bc   :  { %v716_v32 = vadd.f32 %v715_v59, %v1524_v29 }
 0x3be   :  { %v739_v1 = vmul.f32 %v716_v32, %v1169_v33 }
 0x3c0   :  { %v759_v0 = vadd.f32 %v1609_v46, %v739_v1 }
 0x3c2   :  { %776 = vst.msk [vmem:[%s1725_s6 + $0x60] sm:$0xff] %vm763_vm3, %v759_v0 }
 0x3c3   :  { %v718_v26 = vpop.f32.mrf.mxu3 }
 0x3c4   :  { %v719_v58 = vadd.f32 %v718_v26, %v1520_v22 }
 0x3c6   :  { %v740_v3 = vmul.f32 %v719_v58, %v1118_v50 }
 0x3c8   :  { %v760_v37 = vadd.f32 %v1609_v46, %v740_v3 }
 0x3ca   :  { %777 = vst.msk [vmem:[%s1725_s6 + $0x68] sm:$0xff] %vm763_vm3, %v760_v37 }
 0x3cb   :  { %v721_v33 = vpop.f32.mrf.mxu3 }
 0x3cc   :  { %v722_v29 = vadd.f32 %v721_v33, %v1516_v23 }
 0x3ce   :  { %v741_v25 = vmul.f32 %v722_v29, %v1128_v57 }
 0x3d0   :  { %v761_v21 = vadd.f32 %v1609_v46, %v741_v25 }
 0x3d2   :  { %778 = vst.msk [vmem:[%s1725_s6 + $0x70] sm:$0xff] %vm763_vm3, %v761_v21 }
 0x3d3   :  { %v724_v50 = vpop.f32.mrf.mxu3 }
 0x3d4   :  { %v725_v22 = vadd.f32 %v724_v50, %v1513_v16 }
 0x3d6   :  { %v742_v17 = vmul.f32 %v725_v22, %v1063_v61 }
 0x3d8   :  { %v762_v41 = vadd.f32 %v1609_v46, %v742_v17 }
 0x3da   :  { %779 = vst.msk [vmem:[%s1725_s6 + $0x78] sm:$0xff] %vm763_vm3, %v762_v41 }

</bundles_post_ra>
